<compile_context>
chip_gen: v7x
topology: tpu7x:2x2x1
jax: 0.10.0
libtpu: 0.0.40
codegen_flags: <defaults>
</compile_context>

<pallas_src>
import jax
import jax.numpy as jnp
from jax.experimental import pallas as pl
from jax.experimental.pallas import tpu as pltpu

_LANE = 128


def _transpose_kernel(x_ref, o_ref):
    # x_ref: (c_blk, hw_blk)   o_ref: (hw_blk, c_blk)     (batch dim squeezed)
    o_ref[...] = x_ref[...].T            # pure 2-D XLU transpose, no reshape


def _round_down_lane(v: int) -> int:
    return (v // _LANE) * _LANE


def _largest_aligned_divisor(dim: int, cap: int) -> int:
    """Largest multiple of 128 that divides `dim` and is <= cap.

    Requires dim % 128 == 0 and cap >= 128 (callers guarantee both)."""
    t = min(dim, _round_down_lane(cap))
    while dim % t:
        t -= _LANE
    return t


def _default_block_bytes() -> int:
    """Per-block VMEM byte budget (in + out blocks, double-buffered ~ 4x this)."""
    # v5e scoped-VMEM default is 16 MiB -> 2 MiB blocks; v6e/v7x default 32 MiB
    # -> 4 MiB blocks amortize per-step overhead against faster HBM.
    try:
        kind = jax.devices()[0].device_kind.lower()
    except Exception:
        return 2 * 1024 * 1024
    if "v6" in kind or "v7" in kind:
        return 4 * 1024 * 1024
    return 2 * 1024 * 1024


def rearrange_b_c_h_w__to__b_hw_c(x: jax.Array,
                                  *,
                                  hw_tile: int = 2048,
                                  c_tile: int = 512,
                                  block_bytes: int | None = None) -> jax.Array:
    """Pallas equivalent of einops.rearrange(x, 'b c h w -> b (h w) c')."""
    B, C, H, W = x.shape
    HW = H * W
    # Free, contiguous flatten in the wrapper (metadata only): lane axis = HW.
    x3 = x.reshape(B, C, HW)
    out_shape = jax.ShapeDtypeStruct((B, HW, C), x.dtype)
    itemsize = x.dtype.itemsize
    if block_bytes is None:
        block_bytes = _default_block_bytes()
    cost = pl.CostEstimate(flops=0, transcendentals=0,
                           bytes_accessed=2 * B * C * HW * itemsize)

    def call(grid, in_block, in_map, out_block, out_map):
        return pl.pallas_call(
            _transpose_kernel,
            out_shape=out_shape,
            grid=grid,
            in_specs=[pl.BlockSpec(in_block, in_map)],
            out_specs=pl.BlockSpec(out_block, out_map),
            compiler_params=pltpu.CompilerParams(
                dimension_semantics=("parallel",) * len(grid)),
            cost_estimate=cost,
        )(x3)

    c_aligned = (C % _LANE == 0)
    hw_aligned = (HW % _LANE == 0)

    if c_aligned and hw_aligned:
        cap_hw = _round_down_lane(block_bytes // (C * itemsize))
        if cap_hw >= _LANE:
            # Preferred: full C per block -> every output block (t_hw, C) is a
            # contiguous HBM slab (single long-burst write DMA); pipeline over HW.
            t_hw = _largest_aligned_divisor(HW, min(cap_hw, hw_tile))
            return call(
                (HW // t_hw, B),
                (pl.Squeezed(), C, t_hw), lambda i, b: (b, 0, i),
                (pl.Squeezed(), t_hw, C), lambda i, b: (b, i, 0))
        # C too large for a full row within the budget: 2-D lane-dense tiling.
        t_c = _largest_aligned_divisor(C, c_tile)
        cap_hw = _round_down_lane(block_bytes // (t_c * itemsize))
        t_hw = _largest_aligned_divisor(HW, max(_LANE, min(cap_hw, hw_tile)))
        return call(
            (HW // t_hw, C // t_c, B),
            (pl.Squeezed(), t_c, t_hw), lambda i, j, b: (b, j, i),
            (pl.Squeezed(), t_hw, t_c), lambda i, j, b: (b, i, j))

    if c_aligned:
        # HW not 128-aligned (e.g. ViT HW = 196 / 49 / 576): tile C only and
        # keep HW at full extent (full-dim exception to the (8,128) rule).
        cap_c = _round_down_lane(block_bytes // (HW * itemsize))
        if cap_c >= _LANE:
            t_c = _largest_aligned_divisor(C, min(cap_c, max(c_tile, _LANE)))
            return call(
                (C // t_c, B),
                (pl.Squeezed(), t_c, HW), lambda i, b: (b, i, 0),
                (pl.Squeezed(), HW, t_c), lambda i, b: (b, 0, i))

    if hw_aligned and C >= _LANE:
        # C >= 128 but not a multiple of 128: tile HW only, keep full C
        # (output last dim equals the full array dim -> allowed, mostly dense).
        cap_hw = _round_down_lane(block_bytes // (C * itemsize))
        if cap_hw >= _LANE:
            t_hw = _largest_aligned_divisor(HW, min(cap_hw, hw_tile))
            return call(
                (HW // t_hw, B),
                (pl.Squeezed(), C, t_hw), lambda i, b: (b, 0, i),
                (pl.Squeezed(), t_hw, C), lambda i, b: (b, i, 0))

    # Fallback: lane-sparse output (C < 128) or pathologically unaligned/huge
    # rows.  A plain XLA transpose is strictly faster here (masked vst.msk
    # partial stores + ~0.35 us per grid step would dominate any Pallas kernel).
    # TODO(synk): no efficient Pallas path for lane-sparse (C < 128) outputs.
    return jnp.swapaxes(x3, 1, 2)


def _reference(x):
    B, C, H, W = x.shape
    return jnp.transpose(x, (0, 2, 3, 1)).reshape(B, H * W, C)


if __name__ == "__main__":
    key = jax.random.PRNGKey(0)
    ks = jax.random.split(key, 4)

    # 1) Module's small test shape (C=4 < 128): lane-sparse -> XLA fallback.
    xa = jax.random.normal(ks[0], (2, 4, 16, 16), dtype=jnp.float32)
    oa = jax.block_until_ready(rearrange_b_c_h_w__to__b_hw_c(xa))
    assert oa.shape == (2, 256, 4) and oa.dtype == xa.dtype
    assert jnp.array_equal(oa, _reference(xa)), "fallback mismatch"

    # 2) Both axes 128-aligned: Pallas fast path (full-C blocks, HW-pipelined).
    xb = jax.random.normal(ks[1], (2, 128, 16, 16), dtype=jnp.float32)
    ob = jax.block_until_ready(rearrange_b_c_h_w__to__b_hw_c(xb))
    assert ob.shape == (2, 256, 128) and ob.dtype == xb.dtype
    assert jnp.array_equal(ob, _reference(xb)), "full-C fast path mismatch"

    # 3) ViT-style HW=196 (not 128-aligned), C aligned: Pallas C-tiled path.
    xc = jax.random.normal(ks[2], (2, 256, 14, 14), dtype=jnp.float32)
    oc = jax.block_until_ready(rearrange_b_c_h_w__to__b_hw_c(xc))
    assert oc.shape == (2, 196, 256) and oc.dtype == xc.dtype
    assert jnp.array_equal(oc, _reference(xc)), "C-tiled path mismatch"

    # 4) C=192 (>=128 but not 128-aligned), HW aligned: Pallas HW-tiled path.
    xd = jax.random.normal(ks[3], (1, 192, 16, 16), dtype=jnp.float32)
    od = jax.block_until_ready(rearrange_b_c_h_w__to__b_hw_c(xd))
    assert od.shape == (1, 256, 192) and od.dtype == xd.dtype
    assert jnp.array_equal(od, _reference(xd)), "HW-tiled path mismatch"

    print("KERNEL_OK")
</pallas_src>

<mosaic_0001>
module attributes {stable_mosaic.version = 11 : i64} {
  func.func @_transpose_kernel(%arg0: i32, %arg1: i32, %arg2: memref<1x128x256xf32, #tpu.memory_space<vmem>>, %arg3: memref<1x256x128xf32, #tpu.memory_space<vmem>>) attributes {dimension_semantics = [#tpu.dimension_semantics<parallel>, #tpu.dimension_semantics<parallel>], iteration_bounds = array<i64: 1, 2>, scalar_prefetch = 0 : i64, scratch_operands = 0 : i64, tpu.core_type = #tpu.core_type<tc>, window_params = [{transform_indices = @transform_0, window_bounds = array<i64: 1, 128, 256>}, {transform_indices = @transform_1, window_bounds = array<i64: 1, 256, 128>}]} {
    %c0 = arith.constant 0 : index
    %c0_0 = arith.constant 0 : index
    %c0_1 = arith.constant 0 : index
    %0 = vector.load %arg2[%c0, %c0_0, %c0_1] : memref<1x128x256xf32, #tpu.memory_space<vmem>>, vector<1x128x256xf32>
    %1 = vector.shape_cast %0 : vector<1x128x256xf32> to vector<128x256xf32>
    %2 = tpu.transpose %1, [1, 0] : vector<128x256xf32> -> vector<256x128xf32>
    %c0_2 = arith.constant 0 : index
    %c0_3 = arith.constant 0 : index
    %c0_4 = arith.constant 0 : index
    %3 = vector.load %arg3[%c0_2, %c0_3, %c0_4] : memref<1x256x128xf32, #tpu.memory_space<vmem>>, vector<1x256x128xf32>
    %4 = vector.shape_cast %3 : vector<1x256x128xf32> to vector<256x128xf32>
    %5 = vector.shape_cast %2 : vector<256x128xf32> to vector<1x256x128xf32>
    tpu.vector_store %arg3[%c0_2, %c0_3, %c0_4], %5 {strides = array<i32>} : memref<1x256x128xf32, #tpu.memory_space<vmem>>, vector<1x256x128xf32>,
    return
  }
  func.func @transform_0(%arg0: i32, %arg1: i32) -> (i32, i32, i32) {
    %c0_i32 = arith.constant 0 : i32
    %c0_i32_0 = arith.constant 0 : i32
    return %arg1, %c0_i32, %arg0 : i32, i32, i32
  }
  func.func @transform_1(%arg0: i32, %arg1: i32) -> (i32, i32, i32) {
    %c0_i32 = arith.constant 0 : i32
    %c0_i32_0 = arith.constant 0 : i32
    return %arg1, %arg0, %c0_i32 : i32, i32, i32
  }
}

</mosaic_0001>

<bundles_post_ra>
// kernel: tpu_custom_call.1
= control target key start
LH: loop header
LB: loop body
LE: loop exit
PB: predicated region body
PF: predicated region fallthrough
CT: control target
= control target key end

     0   :  { %6 = vsyncpa [#allocation3], 0  ;;  %s847_s0 = inlined_call_operand.hbm [shape: f32[2,128,256], index: 0, kind: input, shape index: {}]   ;;  %s848_s1 = inlined_call_operand.hbm [shape: f32[2,256,128], index: 1, kind: output, shape index: {}]  }
   0x1   :  { %8 = vsyncpa [#allocation3 + $0x1], 0 }
   0x2   :  { %9 = vsyncpa [#allocation4], 0 }
   0x3   :  { %11 = vsyncpa [#allocation4 + $0x1], 0  ;;  %s599_s6 = smov 0   ;;  %s601_s7 = smov 0  }
   0x4   :  { %s603_s8 = smov 0   ;;  %s605_s9 = smov 0  }
   0x5   :  { %s607_s10 = smov 0   ;;  %s609_s11 = smov 0  }
   0x6 LB: > { %s386_s12 = sadd.s32 4294967295, %s581_s11   ;;  %s387_s13 = sadd.s32 4294967294, %s581_s11   ;;  %s581_s11 = sphi %s609_s11, %s17_s11   ;;  %s577_s10 = sphi %s607_s10, %s863_s10   ;;  %s573_s9 = sphi %s605_s9, %s862_s9   ;;  %s569_s8 = sphi %s603_s8, %s861_s8   ;;  %s565_s7 = sphi %s601_s7, %s860_s7   ;;  %s561_s6 = sphi %s599_s6, %s859_s6  }
   0x7   : > { %s26_s14 = sadd.s32 1, %s577_s10  ;;  %s38_s15 = sadd.s32 1, %s569_s8 }
   0x8   : > { %p27_p0 = scmp.ge.s32.totalorder %s26_s14, 2  ;;  %p45_p1 = scmp.ne.s32.totalorder %s569_s8, %s565_s7 }
   0x9   : > { %p46_p2 = scmp.eq.s32.totalorder %s581_s11, 0  ;;  %p51_p3 = scmp.ne.s32.totalorder %s565_s7, %s561_s6 }
   0xa   : > { %s865_s14 = smov (%p27_p0, %s26_s14), 0  ;;  %p52_p5 = scmp.eq.s32.totalorder %s386_s12, 0 }
   0xb   : > { %p640_p4 = por %p46_p2, %p45_p1  ;;  %s33_s17 = ssub.s32 %s577_s10, %s865_s14 }
   0xc   : > { %p77_p6 = scmp.eq.s32.totalorder %s386_s12, 1  ;;  %p36_p7 = scmp.eq.s32.totalorder %s33_s17, 0 }
   0xd   : > { %p646_p8 = por %p52_p5, %p51_p3  ;;  %p83_p10 = scmp.eq.s32.totalorder %s387_s13, 1 }
   0xe   : > { %p650_p9 = por %p77_p6, %p45_p1  ;;  %p415_p13 = scmp.lt.s32.totalorder %s581_s11, 2 }
   0xf   : > { %s655_s20 = scalar_select %p36_p7, %s569_s8, %s38_s15  }
  0x10   : > { %s852_s19 = scalar_select %p650_p9, 1, 0 }
  0x11   : > { %p657_p11 = por %p83_p10, %p51_p3  ;;  %s103_s22 = sand.u32 1, %s569_s8  }
  0x12   : > { %s390_s23 = sshll.u32 %s103_s22, 8  ;;  %s401_s24 = sshll.u32 %s577_s10, 12 }
  0x13   : > { %s853_s21 = scalar_select %p657_p11, 1, 0 }
  0x14   : > { %s668_s27 = scalar_lea.hbm %s847_s0, %s401_s24  ;;  %s107_s28 = scalar_lea.vmem [#allocation2], %s390_s23 }
  0x15   : > { %s116_s29 = sshll.u32 %s107_s28, 4  ;;  %p674_p0 = pnand %p415_p13, %p640_p4  ;;  %s670_s29 = int_to_ptr.vmem [resolvable:$true] %s116_s29 }
  0x16   : > { %s679_s2 = scalar_lea.sflag [#allocation3], %s103_s22  ;;  %s469_s3 = scalar_lea.hbm %s668_s27, 4096 }
  0x17   : > { %p470_p2 = scmp.ne.s32.totalorder %s668_s27, %s469_s3  ;;  %p471_p3 = pneg %p674_p0 }
  0x18   : > { %s474_s12 = scalar_lea.hbm %s847_s0, 8192  ;;  %p475_p4 = scmp.lt.u32.totalorder %s668_s27, %s847_s0 }
  0x19   : > { %p472_p5 = pnand %p471_p3, %p470_p2  ;;  %p476_p7 = scmp.lt.u32.totalorder %s474_s12, %s469_s3 }
  0x1a   : > { %p478_p13 = scmp.lt.u32.totalorder %s469_s3, %s668_s27 }
  0x1b   : > { %p473_p6 = pneg %p472_p5  ;;  %p477_p10 = por %p476_p7, %p475_p4 }
  0x1d   : > { %p479_p12 = por %p478_p13, %p477_p10 }
  0x1f   : > { %p480_p1 = pnand %p479_p12, %p473_p6 }
  0x21   : > { %483 = shalt.err (!%p480_p1)
}
  0x22   : > { %s484_s16 = scalar_lea.vmem %s670_s29, 4096  ;;  %s583_s17 = smov [#allocation2]  }
  0x23   : > { %p485_p2 = scmp.ne.s32.totalorder %s670_s29, %s484_s16  ;;  %s489_s22 = sshll.u32 %s583_s17, 4  ;;  %s490_s22 = int_to_ptr.vmem [resolvable:$false] %s489_s22 }
  0x24   : > { %s491_s23 = scalar_lea.vmem %s490_s22, 8192  ;;  %p492_p9 = scmp.lt.s32.totalorder %s670_s29, %s490_s22 }
  0x25   : > { %p487_p5 = pnand %p485_p2, %p471_p3  ;;  %p493_p4 = scmp.lt.s32.totalorder %s491_s23, %s484_s16 }
  0x27   : > { %p488_p11 = pneg %p487_p5  ;;  %p494_p7 = por %p493_p4, %p492_p9 }
  0x29   : > { %p495_p10 = pnand %p494_p7, %p488_p11 }
  0x2b   : > { %498 = shalt.err (!%p495_p10)
}
  0x2c   : > { %s584_s24 = smov 256   ;;  %s585_s25 = smov 16  }
  0x2d   : > { %410 = dma.hbm_to_vmem [thread:$0]  (!%p674_p0), %s668_s27, 4096, %s670_s29, %s679_s2, %s584_s24, %s584_s24, %s585_s25  }
  0x2e   : > { %p124_p12 = scmp.lt.s32.totalorder %s581_s11, 3  ;;  %p855_p1 = scmp.ge.s32.totalorder %s581_s11, 1 }
  0x30   : > { %p125_p3 = pnand %p855_p1, %p124_p12 }
  0x31   : > { %s711_s26 = sand.u32 (!%p125_p3), 1, %s565_s7  }
  0x32   : > { %128 = sbr.rel (%p125_p3) target bundleno = 263 (0x107), region = 24  ;;  %s394_s28 = sshll.u32 (!%p125_p3), %s711_s26, 8 }
  0x33   : > { %s131_s3 = scalar_lea.sflag (!%p125_p3), [#allocation3], %s711_s26  ;;  %s717_s4 = scalar_lea.vmem (!%p125_p3), [#allocation2], %s394_s28 }
  0x39   : > { %552 = dma.done.wait (%p646_p8), %s131_s3, 4096  }
  0x3a   : > { %554 = vsyncadd (%p646_p8), %s131_s3, 4294963200  ;;  %v156_v0 = vld [vmem:[%s717_s4 + $0x8] sm:$0xff]  ;;  %v155_v1 = vld [vmem:[%s717_s4] sm:$0xff]  ;;  %s757_s18 = scalar_lea.vmem [#allocation5], %s394_s28  ;;  %s402_s27 = sshll.u32 %s573_s9, 12 }
  0x3b   : > { %219 = vxpose.xlu1.b32.start [1/16] %v156_v0, 128  ;;  %187 = vxpose.xlu0.b32.start [1/16] %v155_v1, 128  ;;  %v158_v2 = vld [vmem:[%s717_s4 + $0x18] sm:$0xff]  ;;  %v157_v3 = vld [vmem:[%s717_s4 + $0x10] sm:$0xff]  ;;  %v160_v4 = vld [vmem:[%s717_s4 + $0x28] sm:$0xff]  ;;  %s299_s29 = sshll.u32 %s757_s18, 4  ;;  %s794_s5 = scalar_lea.hbm %s848_s1, %s402_s27  ;;  %s796_s29 = int_to_ptr.vmem [resolvable:$true] %s299_s29 }
  0x3c   : > { %v159_v5 = vld [vmem:[%s717_s4 + $0x20] sm:$0xff]  ;;  %v162_v6 = vld [vmem:[%s717_s4 + $0x38] sm:$0xff]  ;;  %v161_v7 = vld [vmem:[%s717_s4 + $0x30] sm:$0xff]  ;;  %s284_s9 = scalar_lea.sflag [#allocation4], %s711_s26  ;;  %s499_s12 = scalar_lea.vmem %s796_s29, 4096 }
  0x3d   : > { %v164_v8 = vld [vmem:[%s717_s4 + $0x48] sm:$0xff]  ;;  %v163_v9 = vld [vmem:[%s717_s4 + $0x40] sm:$0xff]  ;;  %v166_v10 = vld [vmem:[%s717_s4 + $0x58] sm:$0xff]  ;;  %p500_p8 = scmp.ne.s32.totalorder %s796_s29, %s499_s12  ;;  %p856_p9 = scmp.ne.s32.totalorder %s852_s19, 0 }
  0x3e   : > { %v165_v11 = vld [vmem:[%s717_s4 + $0x50] sm:$0xff]  ;;  %v168_v12 = vld [vmem:[%s717_s4 + $0x68] sm:$0xff]  ;;  %v167_v13 = vld [vmem:[%s717_s4 + $0x60] sm:$0xff]  ;;  %s586_s13 = smov [#allocation5]  }
  0x3f   : > { %220 = vxpose.xlu1.b32.cont [2/16] %v158_v2, 128  ;;  %188 = vxpose.xlu0.b32.cont [2/16] %v157_v3, 128  ;;  %v170_v14 = vld [vmem:[%s717_s4 + $0x78] sm:$0xff]  ;;  %v169_v15 = vld [vmem:[%s717_s4 + $0x70] sm:$0xff]  ;;  %v172_v16 = vld [vmem:[%s717_s4 + $0x88] sm:$0xff]  ;;  %p501_p11 = pnand %p500_p8, %p856_p9  ;;  %s503_s15 = sshll.u32 %s586_s13, 4  ;;  %s504_s15 = int_to_ptr.vmem [resolvable:$false] %s503_s15 }
  0x40   : > { %v171_v17 = vld [vmem:[%s717_s4 + $0x80] sm:$0xff]  ;;  %v174_v18 = vld [vmem:[%s717_s4 + $0x98] sm:$0xff]  ;;  %v173_v19 = vld [vmem:[%s717_s4 + $0x90] sm:$0xff]  ;;  %s505_s16 = scalar_lea.vmem %s504_s15, 8192  ;;  %p506_p6 = scmp.lt.s32.totalorder %s796_s29, %s504_s15 }
  0x41   : > { %v176_v20 = vld [vmem:[%s717_s4 + $0xa8] sm:$0xff]  ;;  %v175_v21 = vld [vmem:[%s717_s4 + $0xa0] sm:$0xff]  ;;  %v178_v22 = vld [vmem:[%s717_s4 + $0xb8] sm:$0xff]  ;;  %p502_p0 = pneg %p501_p11  ;;  %p507_p13 = scmp.lt.s32.totalorder %s505_s16, %s499_s12 }
  0x42   : > { %v177_v23 = vld [vmem:[%s717_s4 + $0xb0] sm:$0xff]  ;;  %v180_v24 = vld [vmem:[%s717_s4 + $0xc8] sm:$0xff]  ;;  %v179_v25 = vld [vmem:[%s717_s4 + $0xc0] sm:$0xff] }
  0x43   : > { %221 = vxpose.xlu1.b32.cont [3/16] %v160_v4, 128  ;;  %189 = vxpose.xlu0.b32.cont [3/16] %v159_v5, 128  ;;  %v182_v26 = vld [vmem:[%s717_s4 + $0xd8] sm:$0xff]  ;;  %v181_v27 = vld [vmem:[%s717_s4 + $0xd0] sm:$0xff]  ;;  %v184_v28 = vld [vmem:[%s717_s4 + $0xe8] sm:$0xff]  ;;  %p508_p2 = por %p507_p13, %p506_p6 }
  0x44   : > { %v183_v29 = vld [vmem:[%s717_s4 + $0xe0] sm:$0xff]  ;;  %v186_v30 = vld [vmem:[%s717_s4 + $0xf8] sm:$0xff]  ;;  %v185_v31 = vld [vmem:[%s717_s4 + $0xf0] sm:$0xff] }
  0x45   : > { %p509_p5 = pnand %p508_p2, %p502_p0 }
  0x47   : > { %222 = vxpose.xlu1.b32.cont [4/16] %v162_v6, 128  ;;  %190 = vxpose.xlu0.b32.cont [4/16] %v161_v7, 128 }
  0x4b   : > { %223 = vxpose.xlu1.b32.cont [5/16] %v164_v8, 128  ;;  %191 = vxpose.xlu0.b32.cont [5/16] %v163_v9, 128 }
  0x4f   : > { %224 = vxpose.xlu1.b32.cont [6/16] %v166_v10, 128  ;;  %192 = vxpose.xlu0.b32.cont [6/16] %v165_v11, 128 }
  0x53   : > { %225 = vxpose.xlu1.b32.cont [7/16] %v168_v12, 128  ;;  %193 = vxpose.xlu0.b32.cont [7/16] %v167_v13, 128 }
  0x57   : > { %226 = vxpose.xlu1.b32.cont [8/16] %v170_v14, 128  ;;  %194 = vxpose.xlu0.b32.cont [8/16] %v169_v15, 128 }
  0x5b   : > { %227 = vxpose.xlu1.b32.cont [9/16] %v172_v16, 128  ;;  %195 = vxpose.xlu0.b32.cont [9/16] %v171_v17, 128 }
  0x5f   : > { %228 = vxpose.xlu1.b32.cont [10/16] %v174_v18, 128  ;;  %196 = vxpose.xlu0.b32.cont [10/16] %v173_v19, 128 }
  0x63   : > { %229 = vxpose.xlu1.b32.cont [11/16] %v176_v20, 128  ;;  %197 = vxpose.xlu0.b32.cont [11/16] %v175_v21, 128 }
  0x67   : > { %230 = vxpose.xlu1.b32.cont [12/16] %v178_v22, 128  ;;  %198 = vxpose.xlu0.b32.cont [12/16] %v177_v23, 128 }
  0x6b   : > { %231 = vxpose.xlu1.b32.cont [13/16] %v180_v24, 128  ;;  %199 = vxpose.xlu0.b32.cont [13/16] %v179_v25, 128 }
  0x6f   : > { %232 = vxpose.xlu1.b32.cont [14/16] %v182_v26, 128  ;;  %200 = vxpose.xlu0.b32.cont [14/16] %v181_v27, 128 }
  0x73   : > { %233 = vxpose.xlu1.b32.cont [15/16] %v184_v28, 128  ;;  %201 = vxpose.xlu0.b32.cont [15/16] %v183_v29, 128 }
  0x77   : > { %234 = vxpose.xlu1.b32.end [16/16] %v186_v30, 128  ;;  %202 = vxpose.xlu0.b32.end [16/16] %v185_v31, 128 }
  0xbb   : > { %v235_v32 = vpop.trf.xlu1  ;;  %v203_v33 = vpop.trf.xlu0 }
  0xbc   : > { %267 = vst [vmem:[%s757_s18 + $0x80] sm:$0xff] %v235_v32  ;;  %251 = vst [vmem:[%s757_s18] sm:$0xff] %v203_v33 }
  0xbf   : > { %v236_v34 = vpop.trf.xlu1  ;;  %v204_v35 = vpop.trf.xlu0 }
  0xc0   : > { %268 = vst [vmem:[%s757_s18 + $0x88] sm:$0xff] %v236_v34  ;;  %252 = vst [vmem:[%s757_s18 + $0x8] sm:$0xff] %v204_v35 }
  0xc3   : > { %v237_v36 = vpop.trf.xlu1  ;;  %v205_v37 = vpop.trf.xlu0 }
  0xc4   : > { %269 = vst [vmem:[%s757_s18 + $0x90] sm:$0xff] %v237_v36  ;;  %253 = vst [vmem:[%s757_s18 + $0x10] sm:$0xff] %v205_v37 }
  0xc7   : > { %v238_v38 = vpop.trf.xlu1  ;;  %v206_v39 = vpop.trf.xlu0 }
  0xc8   : > { %270 = vst [vmem:[%s757_s18 + $0x98] sm:$0xff] %v238_v38  ;;  %254 = vst [vmem:[%s757_s18 + $0x18] sm:$0xff] %v206_v39 }
  0xcb   : > { %v239_v40 = vpop.trf.xlu1  ;;  %v207_v41 = vpop.trf.xlu0 }
  0xcc   : > { %271 = vst [vmem:[%s757_s18 + $0xa0] sm:$0xff] %v239_v40  ;;  %255 = vst [vmem:[%s757_s18 + $0x20] sm:$0xff] %v207_v41 }
  0xcf   : > { %v240_v42 = vpop.trf.xlu1  ;;  %v208_v43 = vpop.trf.xlu0 }
  0xd0   : > { %272 = vst [vmem:[%s757_s18 + $0xa8] sm:$0xff] %v240_v42  ;;  %256 = vst [vmem:[%s757_s18 + $0x28] sm:$0xff] %v208_v43 }
  0xd3   : > { %v241_v44 = vpop.trf.xlu1  ;;  %v209_v45 = vpop.trf.xlu0 }
  0xd4   : > { %273 = vst [vmem:[%s757_s18 + $0xb0] sm:$0xff] %v241_v44  ;;  %257 = vst [vmem:[%s757_s18 + $0x30] sm:$0xff] %v209_v45 }
  0xd7   : > { %v242_v46 = vpop.trf.xlu1  ;;  %v210_v47 = vpop.trf.xlu0 }
  0xd8   : > { %274 = vst [vmem:[%s757_s18 + $0xb8] sm:$0xff] %v242_v46  ;;  %258 = vst [vmem:[%s757_s18 + $0x38] sm:$0xff] %v210_v47 }
  0xdb   : > { %v243_v48 = vpop.trf.xlu1  ;;  %v211_v49 = vpop.trf.xlu0 }
  0xdc   : > { %275 = vst [vmem:[%s757_s18 + $0xc0] sm:$0xff] %v243_v48  ;;  %259 = vst [vmem:[%s757_s18 + $0x40] sm:$0xff] %v211_v49 }
  0xdf   : > { %v244_v50 = vpop.trf.xlu1  ;;  %v212_v51 = vpop.trf.xlu0 }
  0xe0   : > { %276 = vst [vmem:[%s757_s18 + $0xc8] sm:$0xff] %v244_v50  ;;  %260 = vst [vmem:[%s757_s18 + $0x48] sm:$0xff] %v212_v51 }
  0xe3   : > { %v245_v52 = vpop.trf.xlu1  ;;  %v213_v53 = vpop.trf.xlu0 }
  0xe4   : > { %277 = vst [vmem:[%s757_s18 + $0xd0] sm:$0xff] %v245_v52  ;;  %261 = vst [vmem:[%s757_s18 + $0x50] sm:$0xff] %v213_v53 }
  0xe7   : > { %v246_v54 = vpop.trf.xlu1  ;;  %v214_v55 = vpop.trf.xlu0 }
  0xe8   : > { %278 = vst [vmem:[%s757_s18 + $0xd8] sm:$0xff] %v246_v54  ;;  %262 = vst [vmem:[%s757_s18 + $0x58] sm:$0xff] %v214_v55 }
  0xeb   : > { %v247_v56 = vpop.trf.xlu1  ;;  %v215_v57 = vpop.trf.xlu0 }
  0xec   : > { %279 = vst [vmem:[%s757_s18 + $0xe0] sm:$0xff] %v247_v56  ;;  %263 = vst [vmem:[%s757_s18 + $0x60] sm:$0xff] %v215_v57 }
  0xef   : > { %v248_v58 = vpop.trf.xlu1  ;;  %v216_v59 = vpop.trf.xlu0 }
  0xf0   : > { %280 = vst [vmem:[%s757_s18 + $0xe8] sm:$0xff] %v248_v58  ;;  %264 = vst [vmem:[%s757_s18 + $0x68] sm:$0xff] %v216_v59 }
  0xf3   : > { %v249_v60 = vpop.trf.xlu1  ;;  %v217_v61 = vpop.trf.xlu0 }
  0xf4   : > { %281 = vst [vmem:[%s757_s18 + $0xf0] sm:$0xff] %v249_v60  ;;  %265 = vst [vmem:[%s757_s18 + $0x70] sm:$0xff] %v217_v61 }
  0xf7   : > { %v250_v62 = vpop.trf.xlu1  ;;  %v218_v63 = vpop.trf.xlu0 }
  0xf8   : > { %282 = vst [vmem:[%s757_s18 + $0xf8] sm:$0xff] %v250_v62  ;;  %266 = vst [vmem:[%s757_s18 + $0x78] sm:$0xff] %v218_v63 }
  0xf9   : > { %512 = shalt.err (!%p509_p5)
}
  0xfa   : > { %s513_s17 = scalar_lea.hbm %s794_s5, 4096  ;;  %s517_s24 = scalar_lea.hbm %s848_s1, 8192 }
  0xfb   : > { %p514_p4 = scmp.ne.s32.totalorder %s794_s5, %s513_s17  ;;  %p518_p12 = scmp.lt.u32.totalorder %s794_s5, %s848_s1 }
  0xfc   : > { %p519_p1 = scmp.lt.u32.totalorder %s517_s24, %s513_s17  ;;  %p521_p8 = scmp.lt.u32.totalorder %s513_s17, %s794_s5 }
  0xfd   : > { %p515_p7 = pnand %p514_p4, %p856_p9 }
  0xfe   : > { %p520_p3 = por %p519_p1, %p518_p12 }
  0xff   : > { %p516_p10 = pneg %p515_p7 }
 0x100   : > { %p522_p11 = por %p521_p8, %p520_p3 }
 0x102   : > { %p523_p0 = pnand %p522_p11, %p516_p10 }
 0x104   : > { %526 = shalt.err (!%p523_p0)
}
 0x105   : > { %s587_s3 = smov 128   ;;  %s588_s4 = smov 8  }
 0x106   : > { %405 = dma.vmem_to_hbm [thread:$0]  (%p856_p9), %s796_s29, 4096, %s794_s5, %s284_s9, %s587_s3, %s587_s3, %s588_s4  }
 0x107 PF: > { %s314_s18 = sand.u32 1, %s561_s6   ;;  %p857_p6 = scmp.ne.s32.totalorder %s853_s21, 0 }
 0x108   : > { %p858_p13 = scmp.ge.s32.totalorder %s581_s11, 2  ;;  %s315_s27 = scalar_lea.sflag [#allocation4], %s314_s18 }
 0x10a   : > { %p412_p2 = pnand %p858_p13, %p857_p6 }
 0x10c   : > { %556 = dma.done.wait (!%p412_p2), %s315_s27, 4096  }
 0x10d   : > { %558 = vsyncadd (!%p412_p2), %s315_s27, 4294963200  ;;  %s17_s11 = sadd.s32 1, %s581_s11   ;;  %s859_s6 = smov %s565_s7 }
 0x10e   : > { %p14_p5 = scmp.ge.s32.totalorder %s17_s11, 4   ;;  %s860_s7 = smov %s569_s8 }
 0x10f   : > { %s861_s8 = smov %s655_s20  ;;  %s862_s9 = smov %s577_s10 }
 0x110   : > { %s863_s10 = smov %s865_s14  ;;  %16 = sbr.rel (!%p14_p5) target bundleno = 6 (0x6), region = 69 }
 0x117   :  { %320 = vsyncpa [#allocation3], 1 }
 0x118   :  { %322 = vsyncpa [#allocation3 + $0x1], 1 }
 0x119   :  { %323 = vsyncpa [#allocation4], 1 }
 0x11a   :  { %325 = vsyncpa [#allocation4 + $0x1], 1 }

</bundles_post_ra>
